<compile_context>
chip_gen: v6e
topology: v6e:2x2x1
jax: 0.10.0
libtpu: 0.0.40
codegen_flags: <defaults>
</compile_context>

<pallas_src>
import functools

import jax
import jax.numpy as jnp
from jax import lax
from jax.experimental import pallas as pl
from jax.experimental.pallas import tpu as pltpu


def _ceil_to(x, m):
    return -(-x // m) * m


def _laplacian_kernel(x_ref, bw_ref, bh_ref, o_ref, *, k2, thresh):
    """x_ref: (R, Wp) packed mask rows; bw_ref: (Wp, Wp); bh_ref: (R, R); o_ref: (R, Wp)."""
    m = x_ref[...]                                                   # (R, Wp) f32
    # Separable box sum on the MXU (both matmuls accumulate in f32).
    row = jnp.dot(m, bw_ref[...], preferred_element_type=jnp.float32)     # W window sum
    box = jnp.dot(bh_ref[...], row, preferred_element_type=jnp.float32)   # H window sum
    conv = box - jnp.float32(k2) * m                                 # == Laplacian conv on (1-mask, pad=1)
    # clamp + /K^2 + 0.1 threshold folded into a single compare.
    o_ref[...] = jnp.where(conv > jnp.float32(thresh),
                           jnp.float32(1.0), jnp.float32(0.0))


def laplacian_operator(mask_target, boundary_width=3):
    """mask_target: (N, 1, H, W) float32. Returns (N, 1, H, W) float32 in {0, 1}."""
    N, C, H, W = mask_target.shape
    assert C == 1, "LaplacianOperator operates on a single-channel mask"
    K = 2 * boundary_width + 1

    x = mask_target.reshape(N, H, W).astype(jnp.float32)

    # Lane-dense / sublane-aligned padding.  Zero padding is exact: the box sum
    # uses zero fill outside the image, so padded pixels contribute nothing and
    # are sliced off afterwards.
    H_pad = _ceil_to(H, 8)
    W_pad = _ceil_to(W, 128)

    # Pack several batch images per block (amortize per-grid-step overhead),
    # shrinking until the VMEM estimate (blocks + band matrices + matmul
    # temporaries, double-buffered) fits comfortably.
    def vmem_estimate(nb):
        r = nb * H_pad
        blk = r * W_pad * 4
        bands = W_pad * W_pad * 4 + r * r * 4
        return 2 * (2 * blk + bands) + 3 * blk + (2 << 20)

    budget = 40 << 20
    Nb = max(1, min(N, max(1, 512 // H_pad)))
    while Nb > 1 and vmem_estimate(Nb) > budget:
        Nb -= 1
    N_pad = _ceil_to(N, Nb)
    R = Nb * H_pad

    # Pad and fold (batch, H) into a single row axis -> purely 2-D tiles.
    x = jnp.pad(x, ((0, N_pad - N), (0, H_pad - H), (0, W_pad - W)))
    x2 = x.reshape(N_pad * H_pad, W_pad)

    # Band matrices, built once per call in the wrapper (tiny XLA iota+compare),
    # DMA'd into VMEM once thanks to the constant index_map below.
    w_idx = jnp.arange(W_pad, dtype=jnp.int32)
    band_w = (jnp.abs(w_idx[:, None] - w_idx[None, :]) <= boundary_width)
    B_W = band_w.astype(jnp.float32)                                  # (Wp, Wp)

    r_idx = jnp.arange(R, dtype=jnp.int32)
    band_h = (jnp.abs(r_idx[:, None] - r_idx[None, :]) <= boundary_width)
    same_img = (r_idx[:, None] // H_pad) == (r_idx[None, :] // H_pad)
    B_H = (band_h & same_img).astype(jnp.float32)                     # (R, R), block-diagonal

    # Scoped VMEM: sized from an estimate that includes kernel temporaries,
    # capped at 48 MiB so it is safe on v7x (64 MiB physical VMEM).
    vmem_limit = int(min(max(vmem_estimate(Nb), 32 << 20), 48 << 20))
    # TODO(synk): for very large images (e.g. >= 2048^2 on v7x) add an H-tiled
    # grid axis with a 2*boundary_width-row halo (manual DMA) and a strided
    # K-diagonal formulation of B_W so per-block VMEM stays bounded.

    grid = (N_pad // Nb,)
    out2 = pl.pallas_call(
        functools.partial(_laplacian_kernel,
                          k2=float(K * K), thresh=float(0.1 * K * K)),
        out_shape=jax.ShapeDtypeStruct((N_pad * H_pad, W_pad), jnp.float32),
        grid_spec=pltpu.PrefetchScalarGridSpec(
            num_scalar_prefetch=0,
            grid=grid,
            in_specs=[
                pl.BlockSpec((R, W_pad), lambda g: (g, 0)),           # mask rows (per block)
                pl.BlockSpec((W_pad, W_pad), lambda g: (0, 0)),       # B_W, resident
                pl.BlockSpec((R, R), lambda g: (0, 0)),               # B_H, resident
            ],
            out_specs=pl.BlockSpec((R, W_pad), lambda g: (g, 0)),
        ),
        compiler_params=pltpu.CompilerParams(
            dimension_semantics=("parallel",),
            vmem_limit_bytes=vmem_limit,
        ),
    )(x2, B_W, B_H)

    out = out2.reshape(N_pad, H_pad, W_pad)[:N, :H, :W]
    return out.reshape(N, 1, H, W)


def _reference(mask_target, boundary_width=3):
    """Pure-JAX reference mirroring the PyTorch forward."""
    K = 2 * boundary_width + 1
    w = -jnp.ones((K, K), dtype=jnp.float32)
    w = w.at[boundary_width, boundary_width].set(float(K * K - 1))
    w = w.reshape(1, 1, K, K)  # OIHW
    neg = 1.0 - mask_target
    neg = jnp.pad(
        neg,
        ((0, 0), (0, 0), (boundary_width, boundary_width), (boundary_width, boundary_width)),
        mode="constant",
        constant_values=1.0,
    )
    conv = lax.conv_general_dilated(
        neg, w, window_strides=(1, 1), padding="VALID",
        dimension_numbers=("NCHW", "OIHW", "NCHW"),
    )
    v = jnp.maximum(conv, 0.0) / float(K * K)
    return jnp.where(v > 0.1, 1.0, 0.0)


if __name__ == "__main__":
    key = jax.random.PRNGKey(0)
    N, C, H, W = 2, 1, 16, 16
    # Binary mask input, as the module is designed to consume mask targets.
    mask = (jax.random.uniform(key, (N, C, H, W)) > 0.5).astype(jnp.float32)

    out = laplacian_operator(mask, boundary_width=3)
    out = jax.block_until_ready(out)

    ref = _reference(mask, boundary_width=3)
    assert out.shape == (N, C, H, W)
    assert jnp.allclose(out, ref), "Pallas output does not match reference"

    print("KERNEL_OK")
</pallas_src>

<mosaic_0001>
module attributes {stable_mosaic.version = 11 : i64} {
  func.func @_laplacian_kernel(%arg0: i32, %arg1: memref<32x128xf32, #tpu.memory_space<vmem>>, %arg2: memref<128x128xf32, #tpu.memory_space<vmem>>, %arg3: memref<32x32xf32, #tpu.memory_space<vmem>>, %arg4: memref<32x128xf32, #tpu.memory_space<vmem>>) attributes {dimension_semantics = [#tpu.dimension_semantics<parallel>], iteration_bounds = array<i64: 1>, scalar_prefetch = 0 : i64, scratch_operands = 0 : i64, tpu.core_type = #tpu.core_type<tc>, window_params = [{transform_indices = @transform_0, window_bounds = array<i64: 32, 128>}, {pipeline_mode = #tpu.pipeline_mode<synchronous>, transform_indices = @transform_1, window_bounds = array<i64: 128, 128>}, {pipeline_mode = #tpu.pipeline_mode<synchronous>, transform_indices = @transform_2, window_bounds = array<i64: 32, 32>}, {transform_indices = @transform_3, window_bounds = array<i64: 32, 128>}]} {
    %c0 = arith.constant 0 : index
    %c0_0 = arith.constant 0 : index
    %0 = vector.load %arg1[%c0, %c0_0] : memref<32x128xf32, #tpu.memory_space<vmem>>, vector<32x128xf32>
    %c0_1 = arith.constant 0 : index
    %c0_2 = arith.constant 0 : index
    %1 = vector.load %arg2[%c0_1, %c0_2] : memref<128x128xf32, #tpu.memory_space<vmem>>, vector<128x128xf32>
    %cst = arith.constant dense<0.000000e+00> : vector<32x128xf32>
    %2 = tpu.matmul %0, %1, %cst {dimension_numbers = #tpu.dot_dimension_numbers<[1], [0], [0], [1], [0, 0, 1, 1], [], []>} : vector<32x128xf32>, vector<128x128xf32>, vector<32x128xf32> -> vector<32x128xf32>
    %c0_3 = arith.constant 0 : index
    %c0_4 = arith.constant 0 : index
    %3 = vector.load %arg3[%c0_3, %c0_4] : memref<32x32xf32, #tpu.memory_space<vmem>>, vector<32x32xf32>
    %cst_5 = arith.constant dense<0.000000e+00> : vector<32x128xf32>
    %4 = tpu.matmul %3, %2, %cst_5 {dimension_numbers = #tpu.dot_dimension_numbers<[1], [0], [0], [1], [0, 0, 1, 1], [], []>} : vector<32x32xf32>, vector<32x128xf32>, vector<32x128xf32> -> vector<32x128xf32>
    %cst_6 = arith.constant 4.900000e+01 : f32
    %5 = vector.broadcast %cst_6 : f32 to vector<32x128xf32>
    %6 = arith.mulf %5, %0 : vector<32x128xf32>
    %7 = arith.subf %4, %6 : vector<32x128xf32>
    %cst_7 = arith.constant 4.900000e+00 : f32
    %8 = vector.broadcast %cst_7 : f32 to vector<32x128xf32>
    %9 = arith.cmpf ogt, %7, %8 : vector<32x128xf32>
    %cst_8 = arith.constant 1.000000e+00 : f32
    %cst_9 = arith.constant 0.000000e+00 : f32
    %10 = vector.broadcast %cst_8 : f32 to vector<32x128xf32>
    %11 = vector.broadcast %cst_9 : f32 to vector<32x128xf32>
    %12 = arith.select %9, %10, %11 : vector<32x128xi1>, vector<32x128xf32>
    %c0_10 = arith.constant 0 : index
    %c0_11 = arith.constant 0 : index
    %13 = vector.load %arg4[%c0_10, %c0_11] : memref<32x128xf32, #tpu.memory_space<vmem>>, vector<32x128xf32>
    tpu.vector_store %arg4[%c0_10, %c0_11], %12 {strides = array<i32>} : memref<32x128xf32, #tpu.memory_space<vmem>>, vector<32x128xf32>,
    return
  }
  func.func @transform_0(%arg0: i32) -> (i32, i32) {
    %c0_i32 = arith.constant 0 : i32
    %c0_i32_0 = arith.constant 0 : i32
    return %arg0, %c0_i32 : i32, i32
  }
  func.func @transform_1(%arg0: i32) -> (i32, i32) {
    %c0_i32 = arith.constant 0 : i32
    %c0_i32_0 = arith.constant 0 : i32
    %c0_i32_1 = arith.constant 0 : i32
    return %c0_i32, %c0_i32_0 : i32, i32
  }
  func.func @transform_2(%arg0: i32) -> (i32, i32) {
    %c0_i32 = arith.constant 0 : i32
    %c0_i32_0 = arith.constant 0 : i32
    %c0_i32_1 = arith.constant 0 : i32
    return %c0_i32, %c0_i32_0 : i32, i32
  }
  func.func @transform_3(%arg0: i32) -> (i32, i32) {
    %c0_i32 = arith.constant 0 : i32
    %c0_i32_0 = arith.constant 0 : i32
    return %arg0, %c0_i32 : i32, i32
  }
}

</mosaic_0001>

<bundles_post_ra>
// kernel: tpu_custom_call.1
= control target key start
LH: loop header
LB: loop body
LE: loop exit
PB: predicated region body
PF: predicated region fallthrough
CT: control target
= control target key end

     0   :  { %8 = vsyncpa [#allocation3], 0  ;;  %s537_s0 = inlined_call_operand.hbm [shape: f32[32,128], index: 0, kind: input, shape index: {}]   ;;  %s538_s1 = inlined_call_operand.hbm [shape: f32[128,128], index: 1, kind: input, shape index: {}]   ;;  %s539_s2 = inlined_call_operand.hbm [shape: f32[32,32], index: 2, kind: input, shape index: {}]   ;;  %s540_s3 = inlined_call_operand.hbm [shape: f32[32,128], index: 3, kind: output, shape index: {}]  }
   0x1   :  { %9 = vsyncpa [#allocation6], 0 }
   0x2   :  { %10 = vsyncpa [#allocation4], 0  ;;  %s478_s12 = smov [#allocation5]   ;;  %s479_s14 = smov [#allocation2]  }
   0x3   :  { %s28_s13 = sshll.u32 %s478_s12, 4  ;;  %s16_s15 = sshll.u32 %s479_s14, 4  ;;  %s29_s13 = int_to_ptr.vmem [resolvable:$true] %s28_s13  ;;  %s17_s15 = int_to_ptr.vmem [resolvable:$true] %s16_s15 }
   0x4   :  { %s400_s16 = scalar_lea.vmem %s29_s13, 2048  ;;  %p405_p1 = scmp.lt.s32.totalorder %s29_s13, %s29_s13 }
   0x5   :  { %p401_p0 = scmp.ne.s32.totalorder %s29_s13, %s400_s16  ;;  %p406_p2 = scmp.lt.s32.totalorder %s400_s16, %s400_s16 }
   0x7   :  { %p407_p3 = por %p406_p2, %p405_p1 }
   0x9   :  { %p408_p4 = pnand %p407_p3, %p401_p0 }
   0xb   :  { %411 = shalt.err (!%p408_p4)
}
   0xc   :  { %s480_s17 = smov 128   ;;  %s481_s18 = smov 8  }
   0xd   :  { %34 = dma.hbm_to_vmem [thread:$0]  %s538_s1, 2048, %s29_s13, [#allocation6], %s480_s17, %s480_s17, %s481_s18  }
   0xe   :  { %s420_s21 = scalar_lea.vmem %s17_s15, 512  ;;  %p425_p6 = scmp.lt.s32.totalorder %s17_s15, %s17_s15 }
   0xf   :  { %p421_p5 = scmp.ne.s32.totalorder %s17_s15, %s420_s21  ;;  %p426_p7 = scmp.lt.s32.totalorder %s420_s21, %s420_s21 }
  0x11   :  { %p427_p8 = por %p426_p7, %p425_p6 }
  0x13   :  { %p428_p9 = pnand %p427_p8, %p421_p5 }
  0x15   :  { %431 = shalt.err (!%p428_p9)
}
  0x16   :  { %22 = dma.hbm_to_vmem [thread:$0]  %s537_s0, 512, %s17_s15, [#allocation3], %s480_s17, %s480_s17, %s481_s18  }
  0x17   :  { %s482_s24 = smov [#allocation7]  }
  0x18   :  { %s40_s25 = sshll.u32 %s482_s24, 4  ;;  %s41_s25 = int_to_ptr.vmem [resolvable:$true] %s40_s25 }
  0x19   :  { %s440_s26 = scalar_lea.vmem %s41_s25, 512  ;;  %p445_p11 = scmp.lt.s32.totalorder %s41_s25, %s41_s25 }
  0x1a   :  { %p441_p10 = scmp.ne.s32.totalorder %s41_s25, %s440_s26  ;;  %p446_p12 = scmp.lt.s32.totalorder %s440_s26, %s440_s26 }
  0x1c   :  { %p447_p13 = por %p446_p12, %p445_p11 }
  0x1e   :  { %p448_p0 = pnand %p447_p13, %p441_p10 }
  0x20   :  { %451 = shalt.err (!%p448_p0)
}
  0x21   :  { %46 = dma.hbm_to_vmem [thread:$0]  %s539_s2, 512, %s41_s25, [#allocation6], %s480_s17, %s480_s17, %s481_s18  }
  0x22   :  { %472 = dma.done.wait [#allocation3], 512  }
  0x23   :  { %473 = vsyncadd [#allocation3], 4294966784 }
  0x24   :  { %474 = dma.done.wait [#allocation6], 2560  }
  0x25   :  { %475 = vsyncadd [#allocation6], 4294964736  ;;  %v75_v0 = vld [vmem:[#allocation5 + $0x78] sm:$0xff]  ;;  %v74_v1 = vld [vmem:[#allocation5 + $0x70] sm:$0xff]  ;;  %vm165_vm0 = vcmask 261120   ;;  %v483_v36 = vmov 0.0  }
  0x26   :  { %333 = vmatprep.subr.mxu0 %v75_v0  ;;  %v73_v2 = vld [vmem:[#allocation5 + $0x68] sm:$0xff]  ;;  %v72_v3 = vld [vmem:[#allocation5 + $0x60] sm:$0xff]  ;;  %v71_v5 = vld [vmem:[#allocation5 + $0x58] sm:$0xff]  ;;  %s484_s0 = smov [#allocation8]  }
  0x27   :  { %334 = vmatpush3.msra.mxu0 %v75_v0  ;;  %v523_v4 = vld [vmem:[#allocation2] sm:$0xff]  ;;  %v70_v6 = vld [vmem:[#allocation5 + $0x50] sm:$0xff]  ;;  %v69_v7 = vld [vmem:[#allocation5 + $0x48] sm:$0xff]  ;;  %s288_s2 = sshll.u32 %s484_s0, 4  ;;  %s289_s2 = int_to_ptr.vmem [resolvable:$true] %s288_s2 }
  0x28   :  { %335 = vmatprep.subr.mxu0 %v74_v1  ;;  %365 = vmatprep.mubr.f32.mxu0 %v523_v4  ;;  %v68_v8 = vld [vmem:[#allocation5 + $0x40] sm:$0xff]  ;;  %v67_v9 = vld [vmem:[#allocation5 + $0x38] sm:$0xff]  ;;  %v66_v10 = vld [vmem:[#allocation5 + $0x30] sm:$0xff]  ;;  %v263_v29 = vmul.f32 49.0, %v523_v4  ;;  %s452_s28 = scalar_lea.vmem %s289_s2, 512  ;;  %p457_p2 = scmp.lt.s32.totalorder %s289_s2, %s289_s2 }
  0x29   :  { %336 = vmatpush3.msra.mxu0 %v74_v1  ;;  %v65_v11 = vld [vmem:[#allocation5 + $0x28] sm:$0xff]  ;;  %v64_v12 = vld [vmem:[#allocation5 + $0x20] sm:$0xff]  ;;  %v63_v13 = vld [vmem:[#allocation5 + $0x18] sm:$0xff]  ;;  %p453_p1 = scmp.ne.s32.totalorder %s289_s2, %s452_s28  ;;  %p458_p3 = scmp.lt.s32.totalorder %s452_s28, %s452_s28 }
  0x2a   :  { %337 = vmatprep.subr.mxu0 %v73_v2  ;;  %v62_v14 = vld [vmem:[#allocation5 + $0x10] sm:$0xff]  ;;  %v61_v15 = vld [vmem:[#allocation5 + $0x8] sm:$0xff]  ;;  %v60_v16 = vld [vmem:[#allocation5] sm:$0xff] }
  0x2b   :  { %338 = vmatpush3.msra.mxu0 %v73_v2  ;;  %v57_v17 = vld [vmem:[#allocation2 + $0x8] sm:$0xff]  ;;  %v58_v18 = vld [vmem:[#allocation2 + $0x10] sm:$0xff]  ;;  %v59_v19 = vld [vmem:[#allocation2 + $0x18] sm:$0xff]  ;;  %p459_p4 = por %p458_p3, %p457_p2 }
  0x2c   :  { %339 = vmatprep.subr.mxu0 %v72_v3  ;;  %v161_v20 = vld [vmem:[#allocation7] sm:$0xff]  ;;  %v162_v25 = vld [vmem:[#allocation7 + $0x8] sm:$0xff]  ;;  %v163_v26 = vld [vmem:[#allocation7 + $0x10] sm:$0xff]  ;;  %v264_v28 = vmul.f32 49.0, %v57_v17  ;;  %v266_v32 = vmul.f32 49.0, %v59_v19  ;;  %v265_v35 = vmul.f32 49.0, %v58_v18 }
  0x2d   :  { %340 = vmatpush3.msra.mxu0 %v72_v3  ;;  %379 = vmatprep.mubr.msk.f32.mxu1 %vm165_vm0, %v161_v20  ;;  %v164_v27 = vld [vmem:[#allocation7 + $0x18] sm:$0xff]  ;;  %p460_p5 = pnand %p459_p4, %p453_p1 }
  0x2e   :  { %341 = vmatprep.subr.mxu0 %v71_v5 }
  0x2f   :  { %342 = vmatpush3.msra.mxu0 %v71_v5 }
  0x30   :  { %343 = vmatprep.subr.mxu0 %v70_v6 }
  0x31   :  { %344 = vmatpush3.msra.mxu0 %v70_v6 }
  0x32   :  { %345 = vmatprep.subr.mxu0 %v69_v7 }
  0x33   :  { %346 = vmatpush3.msra.mxu0 %v69_v7 }
  0x34   :  { %347 = vmatprep.subr.mxu0 %v68_v8 }
  0x35   :  { %348 = vmatpush3.msra.mxu0 %v68_v8 }
  0x36   :  { %349 = vmatprep.subr.mxu0 %v67_v9 }
  0x37   :  { %350 = vmatpush3.msra.mxu0 %v67_v9 }
  0x38   :  { %351 = vmatprep.subr.mxu0 %v66_v10 }
  0x39   :  { %352 = vmatpush3.msra.mxu0 %v66_v10 }
  0x3a   :  { %353 = vmatprep.subr.mxu0 %v65_v11 }
  0x3b   :  { %354 = vmatpush3.msra.mxu0 %v65_v11 }
  0x3c   :  { %355 = vmatprep.subr.mxu0 %v64_v12 }
  0x3d   :  { %356 = vmatpush3.msra.mxu0 %v64_v12 }
  0x3e   :  { %357 = vmatprep.subr.mxu0 %v63_v13 }
  0x3f   :  { %358 = vmatpush3.msra.mxu0 %v63_v13 }
  0x40   :  { %359 = vmatprep.subr.mxu0 %v62_v14 }
  0x41   :  { %360 = vmatpush3.msra.mxu0 %v62_v14 }
  0x42   :  { %361 = vmatprep.subr.mxu0 %v61_v15 }
  0x43   :  { %362 = vmatpush3.msra.mxu0 %v61_v15 }
  0x44   :  { %363 = vmatprep.subr.mxu0 %v60_v16 }
  0x45   :  { %364 = vmatpush3.msra.mxu0 %v60_v16 }
  0x46   :  { %366 = vmatmul.mubr.f32.vlgmr.msra.gmra.mxu0 %v57_v17 }
  0x47   :  { %368 = vmatprep.mubr.f32.mxu0 %v58_v18 }
  0x4a   :  { %369 = vmatmul.mubr.f32.gmra.mxu0 %v59_v19 }
 0x106   :  { %v367_v21 = vpop.f32.mrf.mxu0 }
 0x108   :  { %v142_v22 = vpop.f32.mrf.mxu0 }
 0x10a   :  { %v370_v23 = vpop.f32.mrf.mxu0 }
 0x10b   :  { %371 = vmatprep.subr.mxu1 %v370_v23 }
 0x10c   :  { %v152_v24 = vpop.f32.mrf.mxu0  ;;  %372 = vmatpush3.msra.mxu1 %v370_v23 }
 0x10d   :  { %373 = vmatprep.subr.mxu1 %v152_v24 }
 0x10e   :  { %374 = vmatpush3.msra.mxu1 %v152_v24 }
 0x10f   :  { %375 = vmatprep.subr.mxu1 %v367_v21 }
 0x110   :  { %376 = vmatpush3.msra.mxu1 %v367_v21 }
 0x111   :  { %377 = vmatprep.subr.mxu1 %v142_v22 }
 0x112   :  { %378 = vmatpush3.msra.mxu1 %v142_v22 }
 0x113   :  { %380 = vmatmul.mubr.msk.f32.vlgmr.msra.gmra.mxu1 %vm165_vm0, %v162_v25 }
 0x114   :  { %382 = vmatprep.mubr.msk.f32.mxu1 %vm165_vm0, %v163_v26 }
 0x117   :  { %383 = vmatmul.mubr.msk.f32.gmra.mxu1 %vm165_vm0, %v164_v27 }
 0x1d3   :  { %v381_v30 = vpop.f32.mrf.mxu1 }
 0x1d4   :  { %v268_v31 = vsub.f32 %v381_v30, %v264_v28 }
 0x1d5   :  { %v244_v33 = vpop.f32.mrf.mxu1 }
 0x1d6   :  { %vm272_vm1 = vcmp.gt.f32.partialorder %v268_v31, 4.9  ;;  %v267_v34 = vsub.f32 %v244_v33, %v263_v29 }
 0x1d7   :  { %v276_v37 = vsel %vm272_vm1, 1.0, %v483_v36  ;;  %v384_v38 = vpop.f32.mrf.mxu1 }
 0x1d8   :  { %280 = vst [vmem:[#allocation8 + $0x8] sm:$0xff] %v276_v37  ;;  %vm271_vm2 = vcmp.gt.f32.partialorder %v267_v34, 4.9  ;;  %v270_v39 = vsub.f32 %v384_v38, %v266_v32 }
 0x1d9   :  { %v275_v40 = vsel %vm271_vm2, 1.0, %v483_v36  ;;  %v254_v41 = vpop.f32.mrf.mxu1 }
 0x1da   :  { %279 = vst [vmem:[#allocation8] sm:$0xff] %v275_v40  ;;  %vm274_vm3 = vcmp.gt.f32.partialorder %v270_v39, 4.9  ;;  %v269_v42 = vsub.f32 %v254_v41, %v265_v35 }
 0x1db   :  { %v278_v43 = vsel %vm274_vm3, 1.0, %v483_v36 }
 0x1dc   :  { %282 = vst [vmem:[#allocation8 + $0x18] sm:$0xff] %v278_v43  ;;  %vm273_vm4 = vcmp.gt.f32.partialorder %v269_v42, 4.9 }
 0x1dd   :  { %v277_v44 = vsel %vm273_vm4, 1.0, %v483_v36 }
 0x1de   :  { %281 = vst [vmem:[#allocation8 + $0x10] sm:$0xff] %v277_v44 }
 0x1df   :  { %463 = shalt.err (!%p460_p5)
}
 0x1e0   :  { %294 = dma.vmem_to_hbm [thread:$0]  %s289_s2, 512, %s540_s3, [#allocation4], %s480_s17, %s480_s17, %s481_s18  }
 0x1e1   :  { %476 = dma.done.wait [#allocation4], 512  }
 0x1e2   :  { %477 = vsyncadd [#allocation4], 4294966784 }
 0x1e3   :  { %298 = vsyncpa [#allocation3], 1 }
 0x1e4   :  { %299 = vsyncpa [#allocation6], 1 }
 0x1e5   :  { %300 = vsyncpa [#allocation4], 1 }

</bundles_post_ra>
